<compile_context>
chip_gen: v7x
topology: tpu7x:2x2x1
jax: 0.10.0
libtpu: 0.0.40
codegen_flags: <defaults>
</compile_context>

<pallas_src>
import functools

import jax
import jax.numpy as jnp
from jax import lax
from jax.experimental import pallas as pl
from jax.experimental.pallas import tpu as pltpu


# ---------------------------------------------------------------------------
# Kernels
# ---------------------------------------------------------------------------
def _centered_single_block_kernel(x_ref, o_ref, *, inv_n):
    """Whole array resident in VMEM: global mean + subtract in one grid step."""
    x = x_ref[...].astype(jnp.float32)          # f32 accumulation (bf16-safe)
    mean = jnp.sum(x) * inv_n                   # hoisted 1/N multiply
    o_ref[...] = (x - mean).astype(o_ref.dtype)


def _global_mean_kernel(x_ref, mean_ref, *, n_rows, inv_n):
    """Tiled pass 1: accumulate the global sum (f32), finalize to the mean."""
    i = pl.program_id(0)

    @pl.when(i == 0)
    def _():
        mean_ref[...] = jnp.zeros_like(mean_ref)

    x = x_ref[...].astype(jnp.float32)
    tile_rows = x.shape[0]
    if n_rows % tile_rows != 0:
        # Ragged last tile: mask rows that fall past the true extent.
        row_ids = i * tile_rows + lax.broadcasted_iota(jnp.int32, x.shape, 0)
        x = jnp.where(row_ids < n_rows, x, 0.0)
    mean_ref[...] = mean_ref[...] + jnp.sum(x)

    @pl.when(i == pl.num_programs(0) - 1)
    def _():
        mean_ref[...] = mean_ref[...] * inv_n


def _subtract_mean_kernel(mean_ref, x_ref, o_ref):
    """Tiled pass 2: broadcast-subtract the (1,1) f32 mean, cast on store."""
    o_ref[...] = (x_ref[...].astype(jnp.float32) - mean_ref[...]).astype(o_ref.dtype)


# ---------------------------------------------------------------------------
# Wrapper helpers
# ---------------------------------------------------------------------------
def _vmem_capacity_bytes() -> int:
    try:
        cap = int(pltpu.get_tpu_info().vmem_capacity_bytes)
        if cap > 0:
            return cap
    except Exception:
        pass
    return 64 * 1024 * 1024  # conservative default (v7x per-TC VMEM)


def _to_2d(x: jax.Array) -> jax.Array:
    """Reshape to a lane-dense 2D layout (global mean: any reshape is legal)."""
    n = x.size
    for cols in (1024, 512, 256, 128):
        if n % cols == 0:
            return x.reshape(n // cols, cols)
    if x.ndim >= 2:
        return x.reshape(-1, x.shape[-1])
    return x.reshape(1, n)


def _centered_single_block(x2d: jax.Array, inv_n: float, vmem_cap: int) -> jax.Array:
    kernel = functools.partial(_centered_single_block_kernel, inv_n=inv_n)
    cost = pl.CostEstimate(flops=2 * x2d.size, transcendentals=0,
                           bytes_accessed=2 * x2d.nbytes)
    params = pltpu.CompilerParams(
        dimension_semantics=("arbitrary",),
        vmem_limit_bytes=int(0.85 * vmem_cap),
    )

    def call(pipeline_mode):
        kw = {} if pipeline_mode is None else {"pipeline_mode": pipeline_mode}
        return pl.pallas_call(
            kernel,
            out_shape=jax.ShapeDtypeStruct(x2d.shape, x2d.dtype),
            grid_spec=pltpu.PrefetchScalarGridSpec(
                num_scalar_prefetch=0,
                grid=(1,),
                in_specs=[pl.BlockSpec(x2d.shape, lambda i: (0, 0), **kw)],
                out_specs=pl.BlockSpec(x2d.shape, lambda i: (0, 0), **kw),
            ),
            compiler_params=params,
            cost_estimate=cost,
        )(x2d)

    try:
        # grid=(1,): the default double-buffer is pure VMEM waste -> Buffered(1).
        return call(pl.Buffered(1))
    except Exception:
        # Fallback for JAX versions without pipeline_mode support on BlockSpec.
        return call(None)


def _centered_tiled(x2d: jax.Array, inv_n: float, vmem_cap: int,
                    tile_rows=None) -> jax.Array:
    rows, cols = x2d.shape
    itemsize = x2d.dtype.itemsize

    if tile_rows is None:
        # Big, full-width (lane-dense) tiles get ~85% of the HBM roofline;
        # shrink by powers of two (staying sublane-aligned) only if the
        # double-buffered in+out tiles (+ f32 temp) would overflow the budget.
        budget = int(0.25 * vmem_cap)
        tile_rows = 1024
        while tile_rows > 8 and 2 * tile_rows * cols * (2 * itemsize + 4) > budget:
            tile_rows //= 2
    tile_rows = min(int(tile_rows), rows)
    if tile_rows < rows:
        tile_rows = max(8, (tile_rows // 8) * 8)      # honor the (8,128) rule
    num_tiles = pl.cdiv(rows, tile_rows)
    vmem_limit = int(0.6 * vmem_cap)

    # Pass 1: global mean. The (1,1) f32 output returns the same block index
    # for every grid step, so it stays VMEM-resident across the "arbitrary"
    # reduction axis and is finalized (×1/N) on the last step.
    mean = pl.pallas_call(
        functools.partial(_global_mean_kernel, n_rows=rows, inv_n=inv_n),
        out_shape=jax.ShapeDtypeStruct((1, 1), jnp.float32),
        grid_spec=pltpu.PrefetchScalarGridSpec(
            num_scalar_prefetch=0,
            grid=(num_tiles,),
            in_specs=[pl.BlockSpec((tile_rows, cols), lambda i: (i, 0))],
            out_specs=pl.BlockSpec((1, 1), lambda i: (0, 0)),
        ),
        compiler_params=pltpu.CompilerParams(
            dimension_semantics=("arbitrary",),
            vmem_limit_bytes=vmem_limit,
        ),
        cost_estimate=pl.CostEstimate(flops=x2d.size, transcendentals=0,
                                      bytes_accessed=x2d.nbytes),
    )(x2d)

    # Pass 2: tiled broadcast-subtract; "parallel" lets the grid shard across
    # v7x's two TensorCores (no effect on single-TC v5e/v6e).
    return pl.pallas_call(
        _subtract_mean_kernel,
        out_shape=jax.ShapeDtypeStruct(x2d.shape, x2d.dtype),
        grid_spec=pltpu.PrefetchScalarGridSpec(
            num_scalar_prefetch=0,
            grid=(num_tiles,),
            in_specs=[pl.BlockSpec((1, 1), lambda i: (0, 0)),
                      pl.BlockSpec((tile_rows, cols), lambda i: (i, 0))],
            out_specs=pl.BlockSpec((tile_rows, cols), lambda i: (i, 0)),
        ),
        compiler_params=pltpu.CompilerParams(
            dimension_semantics=("parallel",),
            vmem_limit_bytes=vmem_limit,
        ),
        cost_estimate=pl.CostEstimate(flops=x2d.size, transcendentals=0,
                                      bytes_accessed=2 * x2d.nbytes),
    )(mean, x2d)


# ---------------------------------------------------------------------------
# Public wrapper: CenteredLayer.forward(X) = X - X.mean()
# ---------------------------------------------------------------------------
def centered_layer(x: jax.Array, *, force_tiled: bool = False, tile_rows=None,
                   small_input_bytes: int = 256 * 1024) -> jax.Array:
    """X - X.mean() over all elements (any rank), matching the torch module."""
    if x.ndim == 0:
        xf = x.astype(jnp.float32)
        return (xf - jnp.mean(xf)).astype(x.dtype)

    # Tiny-input escape hatch: kernel launch overhead dominates; XLA fuses this.
    if not force_tiled and x.nbytes < small_input_bytes:
        xf = x.astype(jnp.float32)
        return (xf - jnp.mean(xf)).astype(x.dtype)

    x2d = _to_2d(x)
    inv_n = 1.0 / float(x2d.size)
    vmem_cap = _vmem_capacity_bytes()

    # Single-block 1R+1W path only when input + output (+ an f32 working copy
    # for sub-f32 dtypes) comfortably fit VMEM; generation-aware via vmem_cap.
    f32_temp = 0 if x2d.dtype == jnp.float32 else 4 * x2d.size
    resident_bytes = 2 * x2d.nbytes + f32_temp
    if not force_tiled and resident_bytes <= int(0.7 * vmem_cap):
        out2d = _centered_single_block(x2d, inv_n, vmem_cap)
    else:
        out2d = _centered_tiled(x2d, inv_n, vmem_cap, tile_rows=tile_rows)
    return out2d.reshape(x.shape)


# ---------------------------------------------------------------------------
# Self-test
# ---------------------------------------------------------------------------
if __name__ == "__main__":
    key = jax.random.PRNGKey(0)
    k1, k2, k3, k4 = jax.random.split(key, 4)

    def ref_fn(x):
        xf = x.astype(jnp.float32)
        return (xf - jnp.mean(xf)).astype(x.dtype)

    # (1) 4D CNN-like activation, forced through the single-block Pallas path.
    x1 = jax.random.normal(k1, (2, 4, 16, 16), dtype=jnp.float32)
    y1 = jax.block_until_ready(centered_layer(x1, small_input_bytes=0))
    assert y1.shape == x1.shape and y1.dtype == x1.dtype
    assert jnp.allclose(y1, ref_fn(x1), atol=1e-5, rtol=1e-5)
    assert abs(float(jnp.mean(y1))) < 1e-4

    # (2) 2D f32, single-block VMEM-resident path (1 read + 1 write).
    x2 = jax.random.normal(k2, (1024, 512), dtype=jnp.float32)
    y2 = jax.block_until_ready(centered_layer(x2))
    assert jnp.allclose(y2, ref_fn(x2), atol=1e-5, rtol=1e-5)

    # (3) Forced two-pass tiled path with a ragged last row-tile.
    x3 = jax.random.normal(k3, (1000, 512), dtype=jnp.float32)
    y3 = jax.block_until_ready(centered_layer(x3, force_tiled=True, tile_rows=256))
    assert y3.shape == x3.shape and y3.dtype == x3.dtype
    assert jnp.allclose(y3, ref_fn(x3), atol=1e-5, rtol=1e-5)

    # (4) bf16 input: verifies float32 accumulation of the global mean.
    x4 = jax.random.normal(k4, (512, 1024), dtype=jnp.bfloat16)
    y4 = jax.block_until_ready(centered_layer(x4))
    assert y4.dtype == jnp.bfloat16
    assert jnp.allclose(y4.astype(jnp.float32), ref_fn(x4).astype(jnp.float32),
                        atol=2e-2, rtol=2e-2)

    # (5) Tiny-input escape hatch (plain JAX, no kernel launch).
    x5 = jax.random.normal(k1, (8, 128), dtype=jnp.float32)
    y5 = jax.block_until_ready(centered_layer(x5))
    assert jnp.allclose(y5, ref_fn(x5), atol=1e-5, rtol=1e-5)

    print("KERNEL_OK")
</pallas_src>

<mosaic_0001>
module attributes {stable_mosaic.version = 11 : i64} {
  func.func @_centered_single_block_kernel(%arg0: i32, %arg1: memref<2x1024xf32, #tpu.memory_space<vmem>>, %arg2: memref<2x1024xf32, #tpu.memory_space<vmem>>) attributes {dimension_semantics = [#tpu.dimension_semantics<arbitrary>], iteration_bounds = array<i64: 1>, scalar_prefetch = 0 : i64, scratch_operands = 0 : i64, tpu.core_type = #tpu.core_type<tc>, window_params = [{pipeline_mode = #tpu.pipeline_mode<synchronous>, transform_indices = @transform_0, window_bounds = array<i64: 2, 1024>}, {pipeline_mode = #tpu.pipeline_mode<synchronous>, transform_indices = @transform_1, window_bounds = array<i64: 2, 1024>}]} {
    %c0 = arith.constant 0 : index
    %c0_0 = arith.constant 0 : index
    %0 = vector.load %arg1[%c0, %c0_0] : memref<2x1024xf32, #tpu.memory_space<vmem>>, vector<2x1024xf32>
    %1 = vector.shape_cast %0 : vector<2x1024xf32> to vector<1x2x1024xf32>
    %cst = arith.constant dense<0.000000e+00> : vector<1xf32>
    %2 = vector.multi_reduction <add>, %1, %cst [1, 2] : vector<1x2x1024xf32> to vector<1xf32>
    %3 = vector.shape_cast %2 : vector<1xf32> to vector<1x1x1xf32>
    %4 = vector.extract %3[0, 0, 0] : f32 from vector<1x1x1xf32>
    %cst_1 = arith.constant 4.8828125E-4 : f32
    %5 = arith.mulf %4, %cst_1 : f32
    %6 = vector.broadcast %5 : f32 to vector<2x1024xf32>
    %7 = arith.subf %0, %6 : vector<2x1024xf32>
    %c0_2 = arith.constant 0 : index
    %c0_3 = arith.constant 0 : index
    %8 = vector.load %arg2[%c0_2, %c0_3] : memref<2x1024xf32, #tpu.memory_space<vmem>>, vector<2x1024xf32>
    tpu.vector_store %arg2[%c0_2, %c0_3], %7 {strides = array<i32>} : memref<2x1024xf32, #tpu.memory_space<vmem>>, vector<2x1024xf32>,
    return
  }
  func.func @transform_0(%arg0: i32) -> (i32, i32) {
    %c0_i32 = arith.constant 0 : i32
    %c0_i32_0 = arith.constant 0 : i32
    %c0_i32_1 = arith.constant 0 : i32
    return %c0_i32, %c0_i32_0 : i32, i32
  }
  func.func @transform_1(%arg0: i32) -> (i32, i32) {
    %c0_i32 = arith.constant 0 : i32
    %c0_i32_0 = arith.constant 0 : i32
    %c0_i32_1 = arith.constant 0 : i32
    return %c0_i32, %c0_i32_0 : i32, i32
  }
}

module attributes {stable_mosaic.version = 11 : i64} {
  func.func @_centered_single_block_kernel(%arg0: i32, %arg1: memref<2x1024xf32, #tpu.memory_space<vmem>>, %arg2: memref<2x1024xf32, #tpu.memory_space<vmem>>) attributes {dimension_semantics = [#tpu.dimension_semantics<arbitrary>], iteration_bounds = array<i64: 1>, scalar_prefetch = 0 : i64, scratch_operands = 0 : i64, tpu.core_type = #tpu.core_type<tc>, window_params = [{pipeline_mode = #tpu.pipeline_mode<synchronous>, transform_indices = @transform_0, window_bounds = array<i64: 2, 1024>}, {pipeline_mode = #tpu.pipeline_mode<synchronous>, transform_indices = @transform_1, window_bounds = array<i64: 2, 1024>}]} {
    %c0 = arith.constant 0 : index
    %c0_0 = arith.constant 0 : index
    %0 = vector.load %arg1[%c0, %c0_0] : memref<2x1024xf32, #tpu.memory_space<vmem>>, vector<2x1024xf32>
    %1 = vector.shape_cast %0 : vector<2x1024xf32> to vector<1x2x1024xf32>
    %cst = arith.constant dense<0.000000e+00> : vector<1xf32>
    %2 = vector.multi_reduction <add>, %1, %cst [1, 2] : vector<1x2x1024xf32> to vector<1xf32>
    %3 = vector.shape_cast %2 : vector<1xf32> to vector<1x1x1xf32>
    %4 = vector.extract %3[0, 0, 0] : f32 from vector<1x1x1xf32>
    %cst_1 = arith.constant 4.8828125E-4 : f32
    %5 = arith.mulf %4, %cst_1 : f32
    %6 = vector.broadcast %5 : f32 to vector<2x1024xf32>
    %7 = arith.subf %0, %6 : vector<2x1024xf32>
    %c0_2 = arith.constant 0 : index
    %c0_3 = arith.constant 0 : index
    %8 = vector.load %arg2[%c0_2, %c0_3] : memref<2x1024xf32, #tpu.memory_space<vmem>>, vector<2x1024xf32>
    tpu.vector_store %arg2[%c0_2, %c0_3], %7 {strides = array<i32>} : memref<2x1024xf32, #tpu.memory_space<vmem>>, vector<2x1024xf32>,
    return
  }
  func.func @transform_0(%arg0: i32) -> (i32, i32) {
    %c0_i32 = arith.constant 0 : i32
    %c0_i32_0 = arith.constant 0 : i32
    %c0_i32_1 = arith.constant 0 : i32
    return %c0_i32, %c0_i32_0 : i32, i32
  }
  func.func @transform_1(%arg0: i32) -> (i32, i32) {
    %c0_i32 = arith.constant 0 : i32
    %c0_i32_0 = arith.constant 0 : i32
    %c0_i32_1 = arith.constant 0 : i32
    return %c0_i32, %c0_i32_0 : i32, i32
  }
}

</mosaic_0001>

<bundles_post_ra>
// kernel: tpu_custom_call.1
= control target key start
LH: loop header
LB: loop body
LE: loop exit
PB: predicated region body
PF: predicated region fallthrough
CT: control target
= control target key end

     0   :  { %6 = vsyncpa [#allocation3], 0  ;;  %s213_s0 = inlined_call_operand.hbm [shape: f32[2,1024], index: 0, kind: input, shape index: {}]   ;;  %s214_s1 = inlined_call_operand.hbm [shape: f32[2,1024], index: 1, kind: output, shape index: {}]  }
   0x1   :  { %7 = vsyncpa [#allocation4], 0  ;;  %s168_s6 = smov [#allocation2]   ;;  %s120_s10 = scalar_lea.hbm %s213_s0, 256 }
   0x2   :  { %s14_s7 = sshll.u32 %s168_s6, 4  ;;  %p121_p0 = scmp.ne.s32.totalorder %s213_s0, %s120_s10  ;;  %s15_s7 = int_to_ptr.vmem [resolvable:$true] %s14_s7 }
   0x3   :  { %p124_p1 = scmp.lt.u32.totalorder %s120_s10, %s213_s0 }
   0x5   :  { %p126_p2 = pnand %p124_p1, %p121_p0 }
   0x7   :  { %129 = shalt.err (!%p126_p2)
}
   0x8   :  { %s130_s15 = scalar_lea.vmem %s15_s7, 256  ;;  %p135_p4 = scmp.lt.s32.totalorder %s15_s7, %s15_s7 }
   0x9   :  { %p131_p3 = scmp.ne.s32.totalorder %s15_s7, %s130_s15  ;;  %p136_p5 = scmp.lt.s32.totalorder %s130_s15, %s130_s15 }
   0xb   :  { %p137_p6 = por %p136_p5, %p135_p4 }
   0xd   :  { %p138_p7 = pnand %p137_p6, %p131_p3 }
   0xf   :  { %141 = shalt.err (!%p138_p7)
}
  0x10   :  { %17 = dma.hbm_to_vmem [thread:$0]  %s213_s0, 256, %s15_s7, [#allocation3]  }
  0x11   :  { %164 = dma.done.wait [#allocation3], 256  }
  0x12   :  { %165 = vsyncadd [#allocation3], 4294967040  ;;  %v29_v0 = vlaneseq  ;;  %v169_v1 = vmov 1983009808   ;;  %v21_v6 = vld [vmem:[#allocation2] sm:$0xff]  ;;  %v22_v7 = vld [vmem:[#allocation2 + $0x8] sm:$0xff] }
  0x13   :  { %v27_v2 = vunpack.c.l.s4 %v169_v1  ;;  %v25_v8 = vcombine.high %v21_v6, %v21_v6  ;;  %vm67_vm0 = vcmask 1041408   ;;  %v42_v12 = vcombine.high %v22_v7, %v22_v7  ;;  %s170_s19 = smov [#allocation5]  }
  0x14   :  { %v30_v3 = vshrl.u32 %v29_v0, 7  ;;  %s104_s20 = sshll.u32 %s170_s19, 4  ;;  %s105_s20 = int_to_ptr.vmem [resolvable:$true] %s104_s20 }
  0x15   :  { %v28_v4 = vunpack.c.0.s8 %v27_v2  ;;  %s142_s21 = scalar_lea.vmem %s105_s20, 256  ;;  %p147_p9 = scmp.lt.s32.totalorder %s105_s20, %s105_s20 }
  0x16   :  { %p143_p8 = scmp.ne.s32.totalorder %s105_s20, %s142_s21  ;;  %p148_p10 = scmp.lt.s32.totalorder %s142_s21, %s142_s21 }
  0x17   :  { %v31_v5 = vsub.s32 %v28_v4, %v30_v3 }
  0x18   :  { %p149_p11 = por %p148_p10, %p147_p9 }
  0x19   :  { %v32_v9 = vrot.slane %v21_v6, %v31_v5  ;;  %v39_v10 = vrot.slane %v25_v8, %v31_v5  ;;  %v49_v13 = vrot.slane %v22_v7, %v31_v5  ;;  %v56_v19 = vrot.slane %v42_v12, %v31_v5 }
  0x1a   :  { %p150_p12 = pnand %p149_p11, %p143_p8 }
  0x1b   :  { %v40_v11 = vcombine.high %v32_v9, %v32_v9  ;;  %v68_v14 = vsel %vm67_vm0, %v32_v9, 0.0  ;;  %v41_v15 = vcombine.high %v39_v10, %v39_v10  ;;  %v71_v17 = vsel %vm67_vm0, %v39_v10, 0.0 }
  0x1c   :  { %v57_v20 = vcombine.high %v49_v13, %v49_v13  ;;  %v75_v23 = vsel %vm67_vm0, %v49_v13, 0.0  ;;  %v58_v25 = vcombine.high %v56_v19, %v56_v19  ;;  %v79_v28 = vsel %vm67_vm0, %v56_v19, 0.0 }
  0x1d   :  { %v69_v16 = vsel %vm67_vm0, %v40_v11, 0.0  ;;  %v73_v21 = vsel %vm67_vm0, %v41_v15, 0.0 }
  0x1e   :  { %v70_v18 = vadd.f32 %v69_v16, %v68_v14  ;;  %v77_v26 = vsel %vm67_vm0, %v57_v20, 0.0  ;;  %v81_v30 = vsel %vm67_vm0, %v58_v25, 0.0 }
  0x20   :  { %v72_v22 = vadd.f32 %v71_v17, %v70_v18 }
  0x22   :  { %v74_v24 = vadd.f32 %v73_v21, %v72_v22 }
  0x24   :  { %v76_v27 = vadd.f32 %v75_v23, %v74_v24 }
  0x26   :  { %v78_v29 = vadd.f32 %v77_v26, %v76_v27 }
  0x28   :  { %v80_v31 = vadd.f32 %v79_v28, %v78_v29 }
  0x2a   :  { %v82_v32 = vadd.f32 %v81_v30, %v80_v31 }
  0x2c   :  { %83 = vadd.xlane.f32.xlu0 %v82_v32 }
  0xb9   :  { %v84_v33 = vpop.xlane.xlu0 %83 }
  0xba   :  { %v85_v34 = vrot.slane %v84_v33, 4 }
  0xbc   :  { %v86_v35 = vadd.f32 %v85_v34, %v84_v33 }
  0xbe   :  { %v87_v36 = vrot.slane %v86_v35, 2 }
  0xc0   :  { %v88_v37 = vadd.f32 %v87_v36, %v86_v35 }
  0xc2   :  { %v89_v38 = vrot.slane %v88_v37, 1 }
  0xc4   :  { %v90_v39 = vadd.f32 %v89_v38, %v88_v37 }
  0xc6   :  { %113 = vpush %v90_v39 }
  0xf7   :  { %s114_s0 = spop %113 }
  0xf8   :  { %s92_s18 = smul.f32 0.00048828125, %s114_s0 }
  0xfa   :  { %v93_v40 = vstv %s92_s18 }
  0xfb   :  { %v94_v41 = vsub.f32 %v21_v6, %v93_v40  ;;  %v95_v42 = vsub.f32 %v22_v7, %v93_v40 }
  0xfd   :  { %96 = vst [vmem:[#allocation5] sm:$0xff] %v94_v41  ;;  %97 = vst [vmem:[#allocation5 + $0x8] sm:$0xff] %v95_v42 }
  0xfe   :  { %153 = shalt.err (!%p150_p12)
}
  0xff   :  { %s154_s24 = scalar_lea.hbm %s214_s1, 256 }
 0x100   :  { %p155_p13 = scmp.ne.s32.totalorder %s214_s1, %s154_s24  ;;  %p158_p0 = scmp.lt.u32.totalorder %s154_s24, %s214_s1 }
 0x102   :  { %p160_p1 = pnand %p158_p0, %p155_p13 }
 0x104   :  { %163 = shalt.err (!%p160_p1)
}
 0x105   :  { %107 = dma.vmem_to_hbm [thread:$0]  %s105_s20, 256, %s214_s1, [#allocation4]  }
 0x106   :  { %166 = dma.done.wait [#allocation4], 256  }
 0x107   :  { %167 = vsyncadd [#allocation4], 4294967040 }
 0x108   :  { %111 = vsyncpa [#allocation3], 1 }
 0x109   :  { %112 = vsyncpa [#allocation4], 1 }

// kernel: tpu_custom_call.1
= control target key start
LH: loop header
LB: loop body
LE: loop exit
PB: predicated region body
PF: predicated region fallthrough
CT: control target
= control target key end

     0   :  { %6 = vsyncpa [#allocation3], 0  ;;  %s213_s0 = inlined_call_operand.hbm [shape: f32[2,1024], index: 0, kind: input, shape index: {}]   ;;  %s214_s1 = inlined_call_operand.hbm [shape: f32[2,1024], index: 1, kind: output, shape index: {}]  }
   0x1   :  { %7 = vsyncpa [#allocation4], 0  ;;  %s168_s6 = smov [#allocation2]   ;;  %s120_s10 = scalar_lea.hbm %s213_s0, 256 }
   0x2   :  { %s14_s7 = sshll.u32 %s168_s6, 4  ;;  %p121_p0 = scmp.ne.s32.totalorder %s213_s0, %s120_s10  ;;  %s15_s7 = int_to_ptr.vmem [resolvable:$true] %s14_s7 }
   0x3   :  { %p124_p1 = scmp.lt.u32.totalorder %s120_s10, %s213_s0 }
   0x5   :  { %p126_p2 = pnand %p124_p1, %p121_p0 }
   0x7   :  { %129 = shalt.err (!%p126_p2)
}
   0x8   :  { %s130_s15 = scalar_lea.vmem %s15_s7, 256  ;;  %p135_p4 = scmp.lt.s32.totalorder %s15_s7, %s15_s7 }
   0x9   :  { %p131_p3 = scmp.ne.s32.totalorder %s15_s7, %s130_s15  ;;  %p136_p5 = scmp.lt.s32.totalorder %s130_s15, %s130_s15 }
   0xb   :  { %p137_p6 = por %p136_p5, %p135_p4 }
   0xd   :  { %p138_p7 = pnand %p137_p6, %p131_p3 }
   0xf   :  { %141 = shalt.err (!%p138_p7)
}
  0x10   :  { %17 = dma.hbm_to_vmem [thread:$0]  %s213_s0, 256, %s15_s7, [#allocation3]  }
  0x11   :  { %164 = dma.done.wait [#allocation3], 256  }
  0x12   :  { %165 = vsyncadd [#allocation3], 4294967040  ;;  %v29_v0 = vlaneseq  ;;  %v169_v1 = vmov 1983009808   ;;  %v21_v6 = vld [vmem:[#allocation2] sm:$0xff]  ;;  %v22_v7 = vld [vmem:[#allocation2 + $0x8] sm:$0xff] }
  0x13   :  { %v27_v2 = vunpack.c.l.s4 %v169_v1  ;;  %v25_v8 = vcombine.high %v21_v6, %v21_v6  ;;  %vm67_vm0 = vcmask 1041408   ;;  %v42_v12 = vcombine.high %v22_v7, %v22_v7  ;;  %s170_s19 = smov [#allocation5]  }
  0x14   :  { %v30_v3 = vshrl.u32 %v29_v0, 7  ;;  %s104_s20 = sshll.u32 %s170_s19, 4  ;;  %s105_s20 = int_to_ptr.vmem [resolvable:$true] %s104_s20 }
  0x15   :  { %v28_v4 = vunpack.c.0.s8 %v27_v2  ;;  %s142_s21 = scalar_lea.vmem %s105_s20, 256  ;;  %p147_p9 = scmp.lt.s32.totalorder %s105_s20, %s105_s20 }
  0x16   :  { %p143_p8 = scmp.ne.s32.totalorder %s105_s20, %s142_s21  ;;  %p148_p10 = scmp.lt.s32.totalorder %s142_s21, %s142_s21 }
  0x17   :  { %v31_v5 = vsub.s32 %v28_v4, %v30_v3 }
  0x18   :  { %p149_p11 = por %p148_p10, %p147_p9 }
  0x19   :  { %v32_v9 = vrot.slane %v21_v6, %v31_v5  ;;  %v39_v10 = vrot.slane %v25_v8, %v31_v5  ;;  %v49_v13 = vrot.slane %v22_v7, %v31_v5  ;;  %v56_v19 = vrot.slane %v42_v12, %v31_v5 }
  0x1a   :  { %p150_p12 = pnand %p149_p11, %p143_p8 }
  0x1b   :  { %v40_v11 = vcombine.high %v32_v9, %v32_v9  ;;  %v68_v14 = vsel %vm67_vm0, %v32_v9, 0.0  ;;  %v41_v15 = vcombine.high %v39_v10, %v39_v10  ;;  %v71_v17 = vsel %vm67_vm0, %v39_v10, 0.0 }
  0x1c   :  { %v57_v20 = vcombine.high %v49_v13, %v49_v13  ;;  %v75_v23 = vsel %vm67_vm0, %v49_v13, 0.0  ;;  %v58_v25 = vcombine.high %v56_v19, %v56_v19  ;;  %v79_v28 = vsel %vm67_vm0, %v56_v19, 0.0 }
  0x1d   :  { %v69_v16 = vsel %vm67_vm0, %v40_v11, 0.0  ;;  %v73_v21 = vsel %vm67_vm0, %v41_v15, 0.0 }
  0x1e   :  { %v70_v18 = vadd.f32 %v69_v16, %v68_v14  ;;  %v77_v26 = vsel %vm67_vm0, %v57_v20, 0.0  ;;  %v81_v30 = vsel %vm67_vm0, %v58_v25, 0.0 }
  0x20   :  { %v72_v22 = vadd.f32 %v71_v17, %v70_v18 }
  0x22   :  { %v74_v24 = vadd.f32 %v73_v21, %v72_v22 }
  0x24   :  { %v76_v27 = vadd.f32 %v75_v23, %v74_v24 }
  0x26   :  { %v78_v29 = vadd.f32 %v77_v26, %v76_v27 }
  0x28   :  { %v80_v31 = vadd.f32 %v79_v28, %v78_v29 }
  0x2a   :  { %v82_v32 = vadd.f32 %v81_v30, %v80_v31 }
  0x2c   :  { %83 = vadd.xlane.f32.xlu0 %v82_v32 }
  0xb9   :  { %v84_v33 = vpop.xlane.xlu0 %83 }
  0xba   :  { %v85_v34 = vrot.slane %v84_v33, 4 }
  0xbc   :  { %v86_v35 = vadd.f32 %v85_v34, %v84_v33 }
  0xbe   :  { %v87_v36 = vrot.slane %v86_v35, 2 }
  0xc0   :  { %v88_v37 = vadd.f32 %v87_v36, %v86_v35 }
  0xc2   :  { %v89_v38 = vrot.slane %v88_v37, 1 }
  0xc4   :  { %v90_v39 = vadd.f32 %v89_v38, %v88_v37 }
  0xc6   :  { %113 = vpush %v90_v39 }
  0xf7   :  { %s114_s0 = spop %113 }
  0xf8   :  { %s92_s18 = smul.f32 0.00048828125, %s114_s0 }
  0xfa   :  { %v93_v40 = vstv %s92_s18 }
  0xfb   :  { %v94_v41 = vsub.f32 %v21_v6, %v93_v40  ;;  %v95_v42 = vsub.f32 %v22_v7, %v93_v40 }
  0xfd   :  { %96 = vst [vmem:[#allocation5] sm:$0xff] %v94_v41  ;;  %97 = vst [vmem:[#allocation5 + $0x8] sm:$0xff] %v95_v42 }
  0xfe   :  { %153 = shalt.err (!%p150_p12)
}
  0xff   :  { %s154_s24 = scalar_lea.hbm %s214_s1, 256 }
 0x100   :  { %p155_p13 = scmp.ne.s32.totalorder %s214_s1, %s154_s24  ;;  %p158_p0 = scmp.lt.u32.totalorder %s154_s24, %s214_s1 }
 0x102   :  { %p160_p1 = pnand %p158_p0, %p155_p13 }
 0x104   :  { %163 = shalt.err (!%p160_p1)
}
 0x105   :  { %107 = dma.vmem_to_hbm [thread:$0]  %s105_s20, 256, %s214_s1, [#allocation4]  }
 0x106   :  { %166 = dma.done.wait [#allocation4], 256  }
 0x107   :  { %167 = vsyncadd [#allocation4], 4294967040 }
 0x108   :  { %111 = vsyncpa [#allocation3], 1 }
 0x109   :  { %112 = vsyncpa [#allocation4], 1 }

</bundles_post_ra>
